<compile_context>
chip_gen: v7x
topology: tpu7x:2x2x1
jax: 0.10.0
libtpu: 0.0.40
codegen_flags: <defaults>
</compile_context>

<pallas_src>
import functools

import jax
import jax.numpy as jnp
from jax.experimental import pallas as pl
from jax.experimental.pallas import tpu as pltpu


# ----------------------------------------------------------------------------
# shared math
# ----------------------------------------------------------------------------
def _layer_norm(x, gamma, beta, eps=1e-6):
    """Matches the PyTorch LayerNorm in the spec: unbiased std, eps added to the std."""
    mean = jnp.mean(x, axis=-1, keepdims=True)
    var = jnp.sum((x - mean) ** 2, axis=-1, keepdims=True) / (x.shape[-1] - 1)
    return gamma * (x - mean) / (jnp.sqrt(var) + eps) + beta


# ----------------------------------------------------------------------------
# Kernel 1: LayerNorm_mha + MultiHeadAttention + residual   (one batch element / step)
# ----------------------------------------------------------------------------
def attn_block_kernel(x_ref, rob_ref, mask_ref, g_ref, b_ref,
                      wq_ref, wk_ref, wv_ref, wo_ref, o_ref, *, num_heads):
    x = x_ref[0].astype(jnp.float32)            # (L, H)   query input
    rob = rob_ref[0].astype(jnp.float32)        # (L, H)   Roberta_output
    key_mask = mask_ref[0] > 0                  # (1, L)   True = masked key position
    L = x.shape[0]

    # LayerNorm of the key/value stream (x_norm2 in the PyTorch code).
    xn = _layer_norm(rob, g_ref[...].astype(jnp.float32), b_ref[...].astype(jnp.float32))

    wq = wq_ref[...].astype(jnp.float32)        # (H, Dk)
    wk = wk_ref[...].astype(jnp.float32)        # (H, Dk)
    wv = wv_ref[...].astype(jnp.float32)        # (H, Dv)
    wo = wo_ref[...].astype(jnp.float32)        # (Dv, H)

    dk = wq.shape[1] // num_heads
    dv = wv.shape[1] // num_heads
    scale = float(dk) ** -0.5

    q = jnp.dot(x, wq, preferred_element_type=jnp.float32) * scale   # (L, Dk)
    k = jnp.dot(xn, wk, preferred_element_type=jnp.float32)          # (L, Dk)
    v = jnp.dot(xn, wv, preferred_element_type=jnp.float32)          # (L, Dv)
    kT = k.T                                                         # (Dk, L), one transpose

    # Per-head attention; merge_heads + output projection fused into an accumulation so no
    # narrow lane-slice stores are needed.
    y = jnp.zeros((L, wo.shape[1]), dtype=jnp.float32)
    for h in range(num_heads):                  # static unroll
        qh = q[:, h * dk:(h + 1) * dk]                               # (L, dk)
        khT = kT[h * dk:(h + 1) * dk, :]                             # (dk, L)
        vh = v[:, h * dv:(h + 1) * dv]                               # (L, dv)
        logits = jnp.dot(qh, khT, preferred_element_type=jnp.float32)  # (L, L)
        logits = jnp.where(key_mask, -1e18, logits)                  # masked_fill
        m = jnp.max(logits, axis=-1, keepdims=True)
        e = jnp.exp(logits - m)
        p = e / jnp.sum(e, axis=-1, keepdims=True)                   # softmax (dropout p=0)
        ctx = jnp.dot(p, vh, preferred_element_type=jnp.float32)     # (L, dv)
        y = y + jnp.dot(ctx, wo[h * dv:(h + 1) * dv, :],
                        preferred_element_type=jnp.float32)

    # x = dropout(Roberta_output + y), dropout p=0 -> identity
    o_ref[0] = (rob + y).astype(o_ref.dtype)


def attention_block(x, rob, mask, ln_gamma, ln_beta, wq, wk, wv, wo, *, num_heads):
    """x, rob: (B, L, H); mask: (B, 1, L) int32; wq/wk/wv: (H, D*); wo: (Dv, H)."""
    B, L, H = rob.shape
    Dk = wq.shape[1]
    Dv = wv.shape[1]
    kernel = functools.partial(attn_block_kernel, num_heads=num_heads)
    return pl.pallas_call(
        kernel,
        out_shape=jax.ShapeDtypeStruct((B, L, H), rob.dtype),
        grid_spec=pltpu.PrefetchScalarGridSpec(
            num_scalar_prefetch=0,
            grid=(B,),
            in_specs=[
                pl.BlockSpec((1, L, H), lambda b: (b, 0, 0)),   # x (queries)
                pl.BlockSpec((1, L, H), lambda b: (b, 0, 0)),   # Roberta_output
                pl.BlockSpec((1, 1, L), lambda b: (b, 0, 0)),   # mask_src
                pl.BlockSpec((1, H), lambda b: (0, 0)),         # LN gamma (resident)
                pl.BlockSpec((1, H), lambda b: (0, 0)),         # LN beta
                pl.BlockSpec((H, Dk), lambda b: (0, 0)),        # Wq
                pl.BlockSpec((H, Dk), lambda b: (0, 0)),        # Wk
                pl.BlockSpec((H, Dv), lambda b: (0, 0)),        # Wv
                pl.BlockSpec((Dv, H), lambda b: (0, 0)),        # Wo
            ],
            out_specs=pl.BlockSpec((1, L, H), lambda b: (b, 0, 0)),
        ),
        compiler_params=pltpu.CompilerParams(
            dimension_semantics=("parallel",),
            vmem_limit_bytes=32 * 1024 * 1024,
        ),
    )(x, rob, mask, ln_gamma.reshape(1, H), ln_beta.reshape(1, H), wq, wk, wv, wo)


# ----------------------------------------------------------------------------
# Kernel 2: LayerNorm_ffn + Conv/ReLU/Conv/ReLU + residual   (one batch element / step)
# ----------------------------------------------------------------------------
def ffn_block_kernel(xin_ref, g_ref, b_ref, w1_ref, b1_ref, w2_ref, b2_ref,
                     o_ref, pad1_ref, pad2_ref, *, pad_left):
    xin = xin_ref[0].astype(jnp.float32)        # (L, H)
    L, H = xin.shape
    K = w1_ref.shape[0]
    F = w1_ref.shape[2]
    Hout = w2_ref.shape[2]
    pad_right = pad1_ref.shape[0] - L - pad_left

    xn = _layer_norm(xin, g_ref[...].astype(jnp.float32), b_ref[...].astype(jnp.float32))

    # ---- conv1 + bias + ReLU: zero padding fused via a VMEM scratch halo (no jnp.pad) ----
    if pad_left > 0:
        pad1_ref[pl.ds(0, pad_left), :] = jnp.zeros((pad_left, H), jnp.float32)
    if pad_right > 0:
        pad1_ref[pl.ds(pad_left + L, pad_right), :] = jnp.zeros((pad_right, H), jnp.float32)
    pad1_ref[pl.ds(pad_left, L), :] = xn

    acc1 = jnp.zeros((L, F), dtype=jnp.float32)
    for k in range(K):                          # K static -> unrolled shifted MXU matmuls
        acc1 = acc1 + jnp.dot(pad1_ref[pl.ds(k, L), :], w1_ref[k],
                              preferred_element_type=jnp.float32)
    h1 = jnp.maximum(acc1 + b1_ref[...].astype(jnp.float32), 0.0)

    # ---- conv2 + bias + ReLU (intermediate h1 never leaves VMEM) ----
    if pad_left > 0:
        pad2_ref[pl.ds(0, pad_left), :] = jnp.zeros((pad_left, F), jnp.float32)
    if pad_right > 0:
        pad2_ref[pl.ds(pad_left + L, pad_right), :] = jnp.zeros((pad_right, F), jnp.float32)
    pad2_ref[pl.ds(pad_left, L), :] = h1

    acc2 = jnp.zeros((L, Hout), dtype=jnp.float32)
    for k in range(K):
        acc2 = acc2 + jnp.dot(pad2_ref[pl.ds(k, L), :], w2_ref[k],
                              preferred_element_type=jnp.float32)
    h2 = jnp.maximum(acc2 + b2_ref[...].astype(jnp.float32), 0.0)

    # y = dropout(x + y), dropout p=0 -> identity
    o_ref[0] = (xin + h2).astype(o_ref.dtype)


def ffn_block(xin, ln_gamma, ln_beta, conv1_w, conv1_b, conv2_w, conv2_b,
              *, kernel_size=3, pad_type="both"):
    """xin: (B, L, H); convN_w in PyTorch Conv1d layout (C_out, C_in, K)."""
    B, L, H = xin.shape
    F = conv1_w.shape[0]
    K = conv1_w.shape[2]
    assert K == kernel_size and conv2_w.shape[0] == H and conv2_w.shape[2] == K
    pad_left = K - 1 if pad_type == "left" else K // 2
    Lp = L + K - 1

    # tap-major weights (K, C_in, C_out) so each tap is a plain MXU matmul
    w1 = jnp.transpose(conv1_w, (2, 1, 0))      # (K, H, F)
    w2 = jnp.transpose(conv2_w, (2, 1, 0))      # (K, F, H)

    kernel = functools.partial(ffn_block_kernel, pad_left=pad_left)
    return pl.pallas_call(
        kernel,
        out_shape=jax.ShapeDtypeStruct((B, L, H), xin.dtype),
        grid_spec=pltpu.PrefetchScalarGridSpec(
            num_scalar_prefetch=0,
            grid=(B,),
            in_specs=[
                pl.BlockSpec((1, L, H), lambda b: (b, 0, 0)),   # residual / LN input
                pl.BlockSpec((1, H), lambda b: (0, 0)),         # LN gamma
                pl.BlockSpec((1, H), lambda b: (0, 0)),         # LN beta
                pl.BlockSpec((K, H, F), lambda b: (0, 0, 0)),   # conv1 taps
                pl.BlockSpec((1, F), lambda b: (0, 0)),         # conv1 bias
                pl.BlockSpec((K, F, H), lambda b: (0, 0, 0)),   # conv2 taps
                pl.BlockSpec((1, H), lambda b: (0, 0)),         # conv2 bias
            ],
            out_specs=pl.BlockSpec((1, L, H), lambda b: (b, 0, 0)),
            scratch_shapes=[
                pltpu.VMEM((Lp, H), jnp.float32),   # padded LN(x) slab
                pltpu.VMEM((Lp, F), jnp.float32),   # padded conv1 activation slab
            ],
        ),
        compiler_params=pltpu.CompilerParams(
            dimension_semantics=("parallel",),
            vmem_limit_bytes=32 * 1024 * 1024,
        ),
    )(xin, ln_gamma.reshape(1, H), ln_beta.reshape(1, H),
      w1, conv1_b.reshape(1, F), w2, conv2_b.reshape(1, H))


# ----------------------------------------------------------------------------
# EncLayer forward (Pallas) and pure-JAX reference
# ----------------------------------------------------------------------------
def enc_layer_forward(inputs, params):
    x, roberta_output, mask_src = inputs
    attn_res = attention_block(
        x, roberta_output, mask_src,
        params["ln_mha_gamma"], params["ln_mha_beta"],
        params["wq"].T, params["wk"].T, params["wv"].T, params["wo"].T,
        num_heads=params["num_heads"])
    y = ffn_block(
        attn_res,
        params["ln_ffn_gamma"], params["ln_ffn_beta"],
        params["conv1_w"], params["conv1_b"],
        params["conv2_w"], params["conv2_b"],
        kernel_size=3, pad_type="both")
    return y, roberta_output, mask_src


def enc_layer_reference(inputs, params):
    """Pure-JAX mirror of the PyTorch EncLayer.forward (dropout p=0)."""
    x, rob, mask = inputs
    HI = jax.lax.Precision.HIGHEST
    nh = params["num_heads"]

    xn2 = _layer_norm(rob, params["ln_mha_gamma"], params["ln_mha_beta"])
    q = jnp.einsum("blh,oh->blo", x, params["wq"], precision=HI)
    k = jnp.einsum("blh,oh->blo", xn2, params["wk"], precision=HI)
    v = jnp.einsum("blh,oh->blo", xn2, params["wv"], precision=HI)
    B, L, Dk = q.shape
    Dv = v.shape[-1]
    dk, dv = Dk // nh, Dv // nh
    split = lambda t, d: t.reshape(B, L, nh, d).transpose(0, 2, 1, 3)
    qh = split(q, dk) * (dk ** -0.5)
    kh = split(k, dk)
    vh = split(v, dv)
    logits = jnp.einsum("bhqd,bhkd->bhqk", qh, kh, precision=HI)
    logits = jnp.where(mask[:, None, :, :] > 0, -1e18, logits)
    p = jax.nn.softmax(logits, axis=-1)
    ctx = jnp.einsum("bhqk,bhkd->bhqd", p, vh, precision=HI)
    ctx = ctx.transpose(0, 2, 1, 3).reshape(B, L, Dv)
    y = jnp.einsum("blv,ov->blo", ctx, params["wo"], precision=HI)
    x1 = rob + y

    xn = _layer_norm(x1, params["ln_ffn_gamma"], params["ln_ffn_beta"])

    def conv_both(t, w, b):                     # w: (C_out, C_in, K)
        K = w.shape[-1]
        tp = jnp.pad(t, ((0, 0), (K // 2, (K - 1) // 2), (0, 0)))
        out = b[None, None, :]
        for kk in range(K):
            out = out + jnp.einsum("blc,oc->blo", tp[:, kk:kk + t.shape[1], :],
                                   w[:, :, kk], precision=HI)
        return out

    h1 = jax.nn.relu(conv_both(xn, params["conv1_w"], params["conv1_b"]))
    h2 = jax.nn.relu(conv_both(h1, params["conv2_w"], params["conv2_b"]))
    return x1 + h2


# ----------------------------------------------------------------------------
if __name__ == "__main__":
    B, L = 2, 8
    hidden, key_depth, value_depth, filter_size, num_heads, K = 32, 32, 32, 64, 4, 3

    key = jax.random.PRNGKey(0)
    keys = jax.random.split(key, 10)

    x = jax.random.normal(keys[0], (B, L, hidden), dtype=jnp.float32)
    rob = jax.random.normal(keys[1], (B, L, hidden), dtype=jnp.float32)
    # source key-padding mask: 1 = masked position (last two keys of batch 0)
    mask = jnp.zeros((B, 1, L), dtype=jnp.int32).at[0, 0, L - 2:].set(1)

    def uni(k, shape, fan_in):
        bnd = 1.0 / (fan_in ** 0.5)
        return jax.random.uniform(k, shape, jnp.float32, -bnd, bnd)

    params = {
        "num_heads": num_heads,
        "ln_mha_gamma": jnp.ones((hidden,), jnp.float32),
        "ln_mha_beta": jnp.zeros((hidden,), jnp.float32),
        "ln_ffn_gamma": jnp.ones((hidden,), jnp.float32),
        "ln_ffn_beta": jnp.zeros((hidden,), jnp.float32),
        # nn.Linear layout [out, in]
        "wq": uni(keys[2], (key_depth, hidden), hidden),
        "wk": uni(keys[3], (key_depth, hidden), hidden),
        "wv": uni(keys[4], (value_depth, hidden), hidden),
        "wo": uni(keys[5], (hidden, value_depth), value_depth),
        # nn.Conv1d layout [out, in, K]
        "conv1_w": uni(keys[6], (filter_size, hidden, K), hidden * K),
        "conv1_b": uni(keys[7], (filter_size,), hidden * K),
        "conv2_w": uni(keys[8], (hidden, filter_size, K), filter_size * K),
        "conv2_b": uni(keys[9], (hidden,), filter_size * K),
    }

    y, _, _ = enc_layer_forward((x, rob, mask), params)
    y = jax.block_until_ready(y)

    ref = enc_layer_reference((x, rob, mask), params)
    assert y.shape == (B, L, hidden)
    max_err = float(jnp.max(jnp.abs(y - ref)))
    assert jnp.allclose(y, ref, atol=5e-3, rtol=5e-3), f"max|diff|={max_err}"

    print("KERNEL_OK")
</pallas_src>

<mosaic_0001>
module attributes {stable_mosaic.version = 11 : i64} {
  func.func @attn_block_kernel(%arg0: i32, %arg1: memref<1x8x32xf32, #tpu.memory_space<vmem>>, %arg2: memref<1x8x32xf32, #tpu.memory_space<vmem>>, %arg3: memref<1x1x8xi32, #tpu.memory_space<vmem>>, %arg4: memref<1x32xf32, #tpu.memory_space<vmem>>, %arg5: memref<1x32xf32, #tpu.memory_space<vmem>>, %arg6: memref<32x32xf32, #tpu.memory_space<vmem>>, %arg7: memref<32x32xf32, #tpu.memory_space<vmem>>, %arg8: memref<32x32xf32, #tpu.memory_space<vmem>>, %arg9: memref<32x32xf32, #tpu.memory_space<vmem>>, %arg10: memref<1x8x32xf32, #tpu.memory_space<vmem>>) attributes {dimension_semantics = [#tpu.dimension_semantics<parallel>], iteration_bounds = array<i64: 2>, scalar_prefetch = 0 : i64, scratch_operands = 0 : i64, tpu.core_type = #tpu.core_type<tc>, window_params = [{transform_indices = @transform_0, window_bounds = array<i64: 1, 8, 32>}, {transform_indices = @transform_1, window_bounds = array<i64: 1, 8, 32>}, {transform_indices = @transform_2, window_bounds = array<i64: 1, 1, 8>}, {pipeline_mode = #tpu.pipeline_mode<synchronous>, transform_indices = @transform_3, window_bounds = array<i64: 1, 32>}, {pipeline_mode = #tpu.pipeline_mode<synchronous>, transform_indices = @transform_4, window_bounds = array<i64: 1, 32>}, {pipeline_mode = #tpu.pipeline_mode<synchronous>, transform_indices = @transform_5, window_bounds = array<i64: 32, 32>}, {pipeline_mode = #tpu.pipeline_mode<synchronous>, transform_indices = @transform_6, window_bounds = array<i64: 32, 32>}, {pipeline_mode = #tpu.pipeline_mode<synchronous>, transform_indices = @transform_7, window_bounds = array<i64: 32, 32>}, {pipeline_mode = #tpu.pipeline_mode<synchronous>, transform_indices = @transform_8, window_bounds = array<i64: 32, 32>}, {transform_indices = @transform_9, window_bounds = array<i64: 1, 8, 32>}]} {
    %c0 = arith.constant 0 : index
    %c0_0 = arith.constant 0 : index
    %c0_1 = arith.constant 0 : index
    %0 = vector.load %arg1[%c0, %c0_0, %c0_1] : memref<1x8x32xf32, #tpu.memory_space<vmem>>, vector<1x8x32xf32>
    %1 = vector.shape_cast %0 : vector<1x8x32xf32> to vector<8x32xf32>
    %c0_2 = arith.constant 0 : index
    %c0_3 = arith.constant 0 : index
    %c0_4 = arith.constant 0 : index
    %2 = vector.load %arg2[%c0_2, %c0_3, %c0_4] : memref<1x8x32xf32, #tpu.memory_space<vmem>>, vector<1x8x32xf32>
    %3 = vector.shape_cast %2 : vector<1x8x32xf32> to vector<8x32xf32>
    %c0_5 = arith.constant 0 : index
    %c0_6 = arith.constant 0 : index
    %c0_7 = arith.constant 0 : index
    %4 = vector.load %arg3[%c0_5, %c0_6, %c0_7] : memref<1x1x8xi32, #tpu.memory_space<vmem>>, vector<1x1x8xi32>
    %5 = vector.shape_cast %4 : vector<1x1x8xi32> to vector<1x8xi32>
    %c0_i32 = arith.constant 0 : i32
    %6 = vector.broadcast %c0_i32 : i32 to vector<1x8xi32>
    %7 = arith.cmpi sgt, %5, %6 : vector<1x8xi32>
    %c0_8 = arith.constant 0 : index
    %c0_9 = arith.constant 0 : index
    %8 = vector.load %arg4[%c0_8, %c0_9] : memref<1x32xf32, #tpu.memory_space<vmem>>, vector<1x32xf32>
    %c0_10 = arith.constant 0 : index
    %c0_11 = arith.constant 0 : index
    %9 = vector.load %arg5[%c0_10, %c0_11] : memref<1x32xf32, #tpu.memory_space<vmem>>, vector<1x32xf32>
    %cst = arith.constant dense<0.000000e+00> : vector<8xf32>
    %10 = vector.multi_reduction <add>, %3, %cst [1] : vector<8x32xf32> to vector<8xf32>
    %11 = vector.shape_cast %10 : vector<8xf32> to vector<8x1xf32>
    %cst_12 = arith.constant 3.200000e+01 : f32
    %12 = vector.broadcast %cst_12 : f32 to vector<8x1xf32>
    %13 = arith.divf %11, %12 : vector<8x1xf32>
    %14 = vector.broadcast %13 : vector<8x1xf32> to vector<8x32xf32>
    %15 = arith.subf %3, %14 : vector<8x32xf32>
    %16 = arith.mulf %15, %15 : vector<8x32xf32>
    %cst_13 = arith.constant dense<0.000000e+00> : vector<8xf32>
    %17 = vector.multi_reduction <add>, %16, %cst_13 [1] : vector<8x32xf32> to vector<8xf32>
    %18 = vector.shape_cast %17 : vector<8xf32> to vector<8x1xf32>
    %cst_14 = arith.constant 3.100000e+01 : f32
    %19 = vector.broadcast %cst_14 : f32 to vector<8x1xf32>
    %20 = arith.divf %18, %19 : vector<8x1xf32>
    %21 = vector.broadcast %13 : vector<8x1xf32> to vector<8x32xf32>
    %22 = arith.subf %3, %21 : vector<8x32xf32>
    %23 = vector.broadcast %8 : vector<1x32xf32> to vector<8x32xf32>
    %24 = arith.mulf %23, %22 : vector<8x32xf32>
    %25 = math.sqrt %20 : vector<8x1xf32>
    %cst_15 = arith.constant 9.99999997E-7 : f32
    %26 = vector.broadcast %cst_15 : f32 to vector<8x1xf32>
    %27 = arith.addf %25, %26 : vector<8x1xf32>
    %28 = vector.broadcast %27 : vector<8x1xf32> to vector<8x32xf32>
    %29 = arith.divf %24, %28 : vector<8x32xf32>
    %30 = vector.broadcast %9 : vector<1x32xf32> to vector<8x32xf32>
    %31 = arith.addf %29, %30 : vector<8x32xf32>
    %c0_16 = arith.constant 0 : index
    %c0_17 = arith.constant 0 : index
    %32 = vector.load %arg6[%c0_16, %c0_17] : memref<32x32xf32, #tpu.memory_space<vmem>>, vector<32x32xf32>
    %c0_18 = arith.constant 0 : index
    %c0_19 = arith.constant 0 : index
    %33 = vector.load %arg7[%c0_18, %c0_19] : memref<32x32xf32, #tpu.memory_space<vmem>>, vector<32x32xf32>
    %c0_20 = arith.constant 0 : index
    %c0_21 = arith.constant 0 : index
    %34 = vector.load %arg8[%c0_20, %c0_21] : memref<32x32xf32, #tpu.memory_space<vmem>>, vector<32x32xf32>
    %c0_22 = arith.constant 0 : index
    %c0_23 = arith.constant 0 : index
    %35 = vector.load %arg9[%c0_22, %c0_23] : memref<32x32xf32, #tpu.memory_space<vmem>>, vector<32x32xf32>
    %cst_24 = arith.constant dense<0.000000e+00> : vector<8x32xf32>
    %36 = tpu.matmul %1, %32, %cst_24 {dimension_numbers = #tpu.dot_dimension_numbers<[1], [0], [0], [1], [0, 0, 1, 1], [], []>} : vector<8x32xf32>, vector<32x32xf32>, vector<8x32xf32> -> vector<8x32xf32>
    %cst_25 = arith.constant 0.353553385 : f32
    %37 = vector.broadcast %cst_25 : f32 to vector<8x32xf32>
    %38 = arith.mulf %36, %37 : vector<8x32xf32>
    %cst_26 = arith.constant dense<0.000000e+00> : vector<8x32xf32>
    %39 = tpu.matmul %31, %33, %cst_26 {dimension_numbers = #tpu.dot_dimension_numbers<[1], [0], [0], [1], [0, 0, 1, 1], [], []>} : vector<8x32xf32>, vector<32x32xf32>, vector<8x32xf32> -> vector<8x32xf32>
    %cst_27 = arith.constant dense<0.000000e+00> : vector<8x32xf32>
    %40 = tpu.matmul %31, %34, %cst_27 {dimension_numbers = #tpu.dot_dimension_numbers<[1], [0], [0], [1], [0, 0, 1, 1], [], []>} : vector<8x32xf32>, vector<32x32xf32>, vector<8x32xf32> -> vector<8x32xf32>
    %41 = tpu.transpose %39, [1, 0] : vector<8x32xf32> -> vector<32x8xf32>
    %cst_28 = arith.constant 0.000000e+00 : f32
    %42 = vector.broadcast %cst_28 : f32 to vector<8x32xf32>
    %43 = vector.extract_strided_slice %38 {offsets = [0, 0], sizes = [8, 8], strides = [1, 1]} : vector<8x32xf32> to vector<8x8xf32>
    %44 = vector.extract_strided_slice %41 {offsets = [0, 0], sizes = [8, 8], strides = [1, 1]} : vector<32x8xf32> to vector<8x8xf32>
    %45 = vector.extract_strided_slice %40 {offsets = [0, 0], sizes = [8, 8], strides = [1, 1]} : vector<8x32xf32> to vector<8x8xf32>
    %cst_29 = arith.constant dense<0.000000e+00> : vector<8x8xf32>
    %46 = tpu.matmul %43, %44, %cst_29 {dimension_numbers = #tpu.dot_dimension_numbers<[1], [0], [0], [1], [0, 0, 1, 1], [], []>} : vector<8x8xf32>, vector<8x8xf32>, vector<8x8xf32> -> vector<8x8xf32>
    %cst_30 = arith.constant -9.99999984E+17 : f32
    %47 = vector.shape_cast %7 : vector<1x8xi1> to vector<1x8xi1>
    %48 = vector.broadcast %47 : vector<1x8xi1> to vector<8x8xi1>
    %49 = vector.broadcast %cst_30 : f32 to vector<8x8xf32>
    %50 = arith.select %48, %49, %46 : vector<8x8xi1>, vector<8x8xf32>
    %cst_31 = arith.constant dense<0xFF800000> : vector<8xf32>
    %51 = vector.multi_reduction <maximumf>, %50, %cst_31 [1] : vector<8x8xf32> to vector<8xf32>
    %52 = vector.shape_cast %51 : vector<8xf32> to vector<8x1xf32>
    %53 = vector.broadcast %52 : vector<8x1xf32> to vector<8x8xf32>
    %54 = arith.subf %50, %53 : vector<8x8xf32>
    %55 = math.exp %54 : vector<8x8xf32>
    %cst_32 = arith.constant dense<0.000000e+00> : vector<8xf32>
    %56 = vector.multi_reduction <add>, %55, %cst_32 [1] : vector<8x8xf32> to vector<8xf32>
    %57 = vector.shape_cast %56 : vector<8xf32> to vector<8x1xf32>
    %58 = vector.broadcast %57 : vector<8x1xf32> to vector<8x8xf32>
    %59 = arith.divf %55, %58 : vector<8x8xf32>
    %cst_33 = arith.constant dense<0.000000e+00> : vector<8x8xf32>
    %60 = tpu.matmul %59, %45, %cst_33 {dimension_numbers = #tpu.dot_dimension_numbers<[1], [0], [0], [1], [0, 0, 1, 1], [], []>} : vector<8x8xf32>, vector<8x8xf32>, vector<8x8xf32> -> vector<8x8xf32>
    %61 = vector.extract_strided_slice %35 {offsets = [0, 0], sizes = [8, 32], strides = [1, 1]} : vector<32x32xf32> to vector<8x32xf32>
    %cst_34 = arith.constant dense<0.000000e+00> : vector<8x32xf32>
    %62 = tpu.matmul %60, %61, %cst_34 {dimension_numbers = #tpu.dot_dimension_numbers<[1], [0], [0], [1], [0, 0, 1, 1], [], []>} : vector<8x8xf32>, vector<8x32xf32>, vector<8x32xf32> -> vector<8x32xf32>
    %63 = arith.addf %42, %62 : vector<8x32xf32>
    %64 = vector.extract_strided_slice %38 {offsets = [0, 8], sizes = [8, 8], strides = [1, 1]} : vector<8x32xf32> to vector<8x8xf32>
    %65 = vector.extract_strided_slice %41 {offsets = [8, 0], sizes = [8, 8], strides = [1, 1]} : vector<32x8xf32> to vector<8x8xf32>
    %66 = vector.extract_strided_slice %40 {offsets = [0, 8], sizes = [8, 8], strides = [1, 1]} : vector<8x32xf32> to vector<8x8xf32>
    %cst_35 = arith.constant dense<0.000000e+00> : vector<8x8xf32>
    %67 = tpu.matmul %64, %65, %cst_35 {dimension_numbers = #tpu.dot_dimension_numbers<[1], [0], [0], [1], [0, 0, 1, 1], [], []>} : vector<8x8xf32>, vector<8x8xf32>, vector<8x8xf32> -> vector<8x8xf32>
    %cst_36 = arith.constant -9.99999984E+17 : f32
    %68 = vector.shape_cast %7 : vector<1x8xi1> to vector<1x8xi1>
    %69 = vector.broadcast %68 : vector<1x8xi1> to vector<8x8xi1>
    %70 = vector.broadcast %cst_36 : f32 to vector<8x8xf32>
    %71 = arith.select %69, %70, %67 : vector<8x8xi1>, vector<8x8xf32>
    %cst_37 = arith.constant dense<0xFF800000> : vector<8xf32>
    %72 = vector.multi_reduction <maximumf>, %71, %cst_37 [1] : vector<8x8xf32> to vector<8xf32>
    %73 = vector.shape_cast %72 : vector<8xf32> to vector<8x1xf32>
    %74 = vector.broadcast %73 : vector<8x1xf32> to vector<8x8xf32>
    %75 = arith.subf %71, %74 : vector<8x8xf32>
    %76 = math.exp %75 : vector<8x8xf32>
    %cst_38 = arith.constant dense<0.000000e+00> : vector<8xf32>
    %77 = vector.multi_reduction <add>, %76, %cst_38 [1] : vector<8x8xf32> to vector<8xf32>
    %78 = vector.shape_cast %77 : vector<8xf32> to vector<8x1xf32>
    %79 = vector.broadcast %78 : vector<8x1xf32> to vector<8x8xf32>
    %80 = arith.divf %76, %79 : vector<8x8xf32>
    %cst_39 = arith.constant dense<0.000000e+00> : vector<8x8xf32>
    %81 = tpu.matmul %80, %66, %cst_39 {dimension_numbers = #tpu.dot_dimension_numbers<[1], [0], [0], [1], [0, 0, 1, 1], [], []>} : vector<8x8xf32>, vector<8x8xf32>, vector<8x8xf32> -> vector<8x8xf32>
    %82 = vector.extract_strided_slice %35 {offsets = [8, 0], sizes = [8, 32], strides = [1, 1]} : vector<32x32xf32> to vector<8x32xf32>
    %cst_40 = arith.constant dense<0.000000e+00> : vector<8x32xf32>
    %83 = tpu.matmul %81, %82, %cst_40 {dimension_numbers = #tpu.dot_dimension_numbers<[1], [0], [0], [1], [0, 0, 1, 1], [], []>} : vector<8x8xf32>, vector<8x32xf32>, vector<8x32xf32> -> vector<8x32xf32>
    %84 = arith.addf %63, %83 : vector<8x32xf32>
    %85 = vector.extract_strided_slice %38 {offsets = [0, 16], sizes = [8, 8], strides = [1, 1]} : vector<8x32xf32> to vector<8x8xf32>
    %86 = vector.extract_strided_slice %41 {offsets = [16, 0], sizes = [8, 8], strides = [1, 1]} : vector<32x8xf32> to vector<8x8xf32>
    %87 = vector.extract_strided_slice %40 {offsets = [0, 16], sizes = [8, 8], strides = [1, 1]} : vector<8x32xf32> to vector<8x8xf32>
    %cst_41 = arith.constant dense<0.000000e+00> : vector<8x8xf32>
    %88 = tpu.matmul %85, %86, %cst_41 {dimension_numbers = #tpu.dot_dimension_numbers<[1], [0], [0], [1], [0, 0, 1, 1], [], []>} : vector<8x8xf32>, vector<8x8xf32>, vector<8x8xf32> -> vector<8x8xf32>
    %cst_42 = arith.constant -9.99999984E+17 : f32
    %89 = vector.shape_cast %7 : vector<1x8xi1> to vector<1x8xi1>
    %90 = vector.broadcast %89 : vector<1x8xi1> to vector<8x8xi1>
    %91 = vector.broadcast %cst_42 : f32 to vector<8x8xf32>
    %92 = arith.select %90, %91, %88 : vector<8x8xi1>, vector<8x8xf32>
    %cst_43 = arith.constant dense<0xFF800000> : vector<8xf32>
    %93 = vector.multi_reduction <maximumf>, %92, %cst_43 [1] : vector<8x8xf32> to vector<8xf32>
    %94 = vector.shape_cast %93 : vector<8xf32> to vector<8x1xf32>
    %95 = vector.broadcast %94 : vector<8x1xf32> to vector<8x8xf32>
    %96 = arith.subf %92, %95 : vector<8x8xf32>
    %97 = math.exp %96 : vector<8x8xf32>
    %cst_44 = arith.constant dense<0.000000e+00> : vector<8xf32>
    %98 = vector.multi_reduction <add>, %97, %cst_44 [1] : vector<8x8xf32> to vector<8xf32>
    %99 = vector.shape_cast %98 : vector<8xf32> to vector<8x1xf32>
    %100 = vector.broadcast %99 : vector<8x1xf32> to vector<8x8xf32>
    %101 = arith.divf %97, %100 : vector<8x8xf32>
    %cst_45 = arith.constant dense<0.000000e+00> : vector<8x8xf32>
    %102 = tpu.matmul %101, %87, %cst_45 {dimension_numbers = #tpu.dot_dimension_numbers<[1], [0], [0], [1], [0, 0, 1, 1], [], []>} : vector<8x8xf32>, vector<8x8xf32>, vector<8x8xf32> -> vector<8x8xf32>
    %103 = vector.extract_strided_slice %35 {offsets = [16, 0], sizes = [8, 32], strides = [1, 1]} : vector<32x32xf32> to vector<8x32xf32>
    %cst_46 = arith.constant dense<0.000000e+00> : vector<8x32xf32>
    %104 = tpu.matmul %102, %103, %cst_46 {dimension_numbers = #tpu.dot_dimension_numbers<[1], [0], [0], [1], [0, 0, 1, 1], [], []>} : vector<8x8xf32>, vector<8x32xf32>, vector<8x32xf32> -> vector<8x32xf32>
    %105 = arith.addf %84, %104 : vector<8x32xf32>
    %106 = vector.extract_strided_slice %38 {offsets = [0, 24], sizes = [8, 8], strides = [1, 1]} : vector<8x32xf32> to vector<8x8xf32>
    %107 = vector.extract_strided_slice %41 {offsets = [24, 0], sizes = [8, 8], strides = [1, 1]} : vector<32x8xf32> to vector<8x8xf32>
    %108 = vector.extract_strided_slice %40 {offsets = [0, 24], sizes = [8, 8], strides = [1, 1]} : vector<8x32xf32> to vector<8x8xf32>
    %cst_47 = arith.constant dense<0.000000e+00> : vector<8x8xf32>
    %109 = tpu.matmul %106, %107, %cst_47 {dimension_numbers = #tpu.dot_dimension_numbers<[1], [0], [0], [1], [0, 0, 1, 1], [], []>} : vector<8x8xf32>, vector<8x8xf32>, vector<8x8xf32> -> vector<8x8xf32>
    %cst_48 = arith.constant -9.99999984E+17 : f32
    %110 = vector.shape_cast %7 : vector<1x8xi1> to vector<1x8xi1>
    %111 = vector.broadcast %110 : vector<1x8xi1> to vector<8x8xi1>
    %112 = vector.broadcast %cst_48 : f32 to vector<8x8xf32>
    %113 = arith.select %111, %112, %109 : vector<8x8xi1>, vector<8x8xf32>
    %cst_49 = arith.constant dense<0xFF800000> : vector<8xf32>
    %114 = vector.multi_reduction <maximumf>, %113, %cst_49 [1] : vector<8x8xf32> to vector<8xf32>
    %115 = vector.shape_cast %114 : vector<8xf32> to vector<8x1xf32>
    %116 = vector.broadcast %115 : vector<8x1xf32> to vector<8x8xf32>
    %117 = arith.subf %113, %116 : vector<8x8xf32>
    %118 = math.exp %117 : vector<8x8xf32>
    %cst_50 = arith.constant dense<0.000000e+00> : vector<8xf32>
    %119 = vector.multi_reduction <add>, %118, %cst_50 [1] : vector<8x8xf32> to vector<8xf32>
    %120 = vector.shape_cast %119 : vector<8xf32> to vector<8x1xf32>
    %121 = vector.broadcast %120 : vector<8x1xf32> to vector<8x8xf32>
    %122 = arith.divf %118, %121 : vector<8x8xf32>
    %cst_51 = arith.constant dense<0.000000e+00> : vector<8x8xf32>
    %123 = tpu.matmul %122, %108, %cst_51 {dimension_numbers = #tpu.dot_dimension_numbers<[1], [0], [0], [1], [0, 0, 1, 1], [], []>} : vector<8x8xf32>, vector<8x8xf32>, vector<8x8xf32> -> vector<8x8xf32>
    %124 = vector.extract_strided_slice %35 {offsets = [24, 0], sizes = [8, 32], strides = [1, 1]} : vector<32x32xf32> to vector<8x32xf32>
    %cst_52 = arith.constant dense<0.000000e+00> : vector<8x32xf32>
    %125 = tpu.matmul %123, %124, %cst_52 {dimension_numbers = #tpu.dot_dimension_numbers<[1], [0], [0], [1], [0, 0, 1, 1], [], []>} : vector<8x8xf32>, vector<8x32xf32>, vector<8x32xf32> -> vector<8x32xf32>
    %126 = arith.addf %105, %125 : vector<8x32xf32>
    %127 = arith.addf %3, %126 : vector<8x32xf32>
    %c0_53 = arith.constant 0 : index
    %c0_54 = arith.constant 0 : index
    %c0_55 = arith.constant 0 : index
    %128 = vector.load %arg10[%c0_53, %c0_54, %c0_55] : memref<1x8x32xf32, #tpu.memory_space<vmem>>, vector<1x8x32xf32>
    %129 = vector.shape_cast %128 : vector<1x8x32xf32> to vector<8x32xf32>
    %130 = vector.shape_cast %127 : vector<8x32xf32> to vector<1x8x32xf32>
    tpu.vector_store %arg10[%c0_53, %c0_54, %c0_55], %130 {strides = array<i32>} : memref<1x8x32xf32, #tpu.memory_space<vmem>>, vector<1x8x32xf32>,
    return
  }
  func.func @transform_0(%arg0: i32) -> (i32, i32, i32) {
    %c0_i32 = arith.constant 0 : i32
    %c0_i32_0 = arith.constant 0 : i32
    %c0_i32_1 = arith.constant 0 : i32
    return %arg0, %c0_i32, %c0_i32_0 : i32, i32, i32
  }
  func.func @transform_1(%arg0: i32) -> (i32, i32, i32) {
    %c0_i32 = arith.constant 0 : i32
    %c0_i32_0 = arith.constant 0 : i32
    %c0_i32_1 = arith.constant 0 : i32
    return %arg0, %c0_i32, %c0_i32_0 : i32, i32, i32
  }
  func.func @transform_2(%arg0: i32) -> (i32, i32, i32) {
    %c0_i32 = arith.constant 0 : i32
    %c0_i32_0 = arith.constant 0 : i32
    %c0_i32_1 = arith.constant 0 : i32
    return %arg0, %c0_i32, %c0_i32_0 : i32, i32, i32
  }
  func.func @transform_3(%arg0: i32) -> (i32, i32) {
    %c0_i32 = arith.constant 0 : i32
    %c0_i32_0 = arith.constant 0 : i32
    %c0_i32_1 = arith.constant 0 : i32
    return %c0_i32, %c0_i32_0 : i32, i32
  }
  func.func @transform_4(%arg0: i32) -> (i32, i32) {
    %c0_i32 = arith.constant 0 : i32
    %c0_i32_0 = arith.constant 0 : i32
    %c0_i32_1 = arith.constant 0 : i32
    return %c0_i32, %c0_i32_0 : i32, i32
  }
  func.func @transform_5(%arg0: i32) -> (i32, i32) {
    %c0_i32 = arith.constant 0 : i32
    %c0_i32_0 = arith.constant 0 : i32
    %c0_i32_1 = arith.constant 0 : i32
    return %c0_i32, %c0_i32_0 : i32, i32
  }
  func.func @transform_6(%arg0: i32) -> (i32, i32) {
    %c0_i32 = arith.constant 0 : i32
    %c0_i32_0 = arith.constant 0 : i32
    %c0_i32_1 = arith.constant 0 : i32
    return %c0_i32, %c0_i32_0 : i32, i32
  }
  func.func @transform_7(%arg0: i32) -> (i32, i32) {
    %c0_i32 = arith.constant 0 : i32
    %c0_i32_0 = arith.constant 0 : i32
    %c0_i32_1 = arith.constant 0 : i32
    return %c0_i32, %c0_i32_0 : i32, i32
  }
  func.func @transform_8(%arg0: i32) -> (i32, i32) {
    %c0_i32 = arith.constant 0 : i32
    %c0_i32_0 = arith.constant 0 : i32
    %c0_i32_1 = arith.constant 0 : i32
    return %c0_i32, %c0_i32_0 : i32, i32
  }
  func.func @transform_9(%arg0: i32) -> (i32, i32, i32) {
    %c0_i32 = arith.constant 0 : i32
    %c0_i32_0 = arith.constant 0 : i32
    %c0_i32_1 = arith.constant 0 : i32
    return %arg0, %c0_i32, %c0_i32_0 : i32, i32, i32
  }
}

</mosaic_0001>

<bundles_post_ra>
// kernel: tpu_custom_call.1
= control target key start
LH: loop header
LB: loop body
LE: loop exit
PB: predicated region body
PF: predicated region fallthrough
CT: control target
= control target key end

     0   :  { %s2952_s0 = inlined_call_operand.hbm [shape: f32[2,8,32], index: 0, kind: input, shape index: {}]   ;;  %s2953_s1 = inlined_call_operand.hbm [shape: f32[2,8,32], index: 1, kind: input, shape index: {}]   ;;  %s2954_s2 = inlined_call_operand.vmem [shape: s32[2,1,8], index: 2, kind: input, shape index: {}]   ;;  %s2955_s3 = inlined_call_operand.vmem [shape: f32[1,32], index: 3, kind: input, shape index: {}]   ;;  %s2956_s4 = inlined_call_operand.vmem [shape: f32[1,32], index: 4, kind: input, shape index: {}]   ;;  %s2957_s5 = inlined_call_operand.hbm [shape: f32[32,32], index: 5, kind: input, shape index: {}]   ;;  %s2958_s6 = inlined_call_operand.hbm [shape: f32[32,32], index: 6, kind: input, shape index: {}]   ;;  %s2959_s7 = inlined_call_operand.hbm [shape: f32[32,32], index: 7, kind: input, shape index: {}]   ;;  %s2960_s8 = inlined_call_operand.hbm [shape: f32[32,32], index: 8, kind: input, shape index: {}]   ;;  %s2961_s9 = inlined_call_operand.hbm [shape: f32[2,8,32], index: 9, kind: output, shape index: {}]  }
   0x1   :  { %2967 = sst [smem:[#allocation21_spill]] %s2957_s5 }
   0x2   :  { %2968 = sst [smem:[#allocation22_spill]] %s2958_s6 }
   0x3   :  { %2969 = sst [smem:[#allocation23_spill]] %s2959_s7 }
   0x4   :  { %2970 = sst [smem:[#allocation24_spill]] %s2960_s8 }
   0x5   :  { %2971 = sst [smem:[#allocation25_spill]] %s2961_s9 }
   0x6   :  { %14 = vsyncpa [#allocation3], 0 }
   0x7   :  { %16 = vsyncpa [#allocation3 + $0x1], 0 }
   0x8   :  { %17 = vsyncpa [#allocation6], 0 }
   0x9   :  { %19 = vsyncpa [#allocation6 + $0x1], 0 }
   0xa   :  { %20 = vsyncpa [#allocation9], 0 }
   0xb   :  { %21 = vsyncpa [#allocation12], 0 }
   0xc   :  { %22 = vsyncpa [#allocation4], 0 }
   0xd   :  { %24 = vsyncpa [#allocation4 + $0x1], 0  ;;  %s2487_s30 = smov 0   ;;  %s2489_s10 = smov 0  }
   0xe   :  { %s2491_s11 = smov 0   ;;  %s2493_s12 = smov 0  }
   0xf LB: > { %s2421_s13 = smov [#allocation7]   ;;  %s2508_s15 = sadd.s32 4294967295, %s2419_s12   ;;  %s2419_s12 = sphi %s2493_s12, %s3002_s12   ;;  %s2415_s11 = sphi %s2491_s11, %s3001_s11   ;;  %s2411_s10 = sphi %s2489_s10, %s3000_s10   ;;  %s2407_s30 = sphi %s2487_s30, %s2999_s30  }
  0x10   : > { %s283_s14 = sshll.u32 %s2421_s13, 4  ;;  %p1851_p0 = scmp.ge.s32.totalorder %s2419_s12, 1  ;;  %s2513_s14 = int_to_ptr.vmem [resolvable:$true] %s283_s14 }
  0x11   : > { %p2963_p1 = scmp.eq.s32.totalorder %s2508_s15, 0  ;;  %p265_p2 = scmp.lt.s32.totalorder %s2419_s12, 3 }
  0x12   : > { %s2422_s17 = smov [#allocation8]   ;;  %s2423_s20 = smov [#allocation10]  }
  0x13   : > { %p2515_p3 = pnand %p1851_p0, %p265_p2  ;;  %s296_s18 = sshll.u32 %s2422_s17, 4  ;;  %s2528_s18 = int_to_ptr.vmem [resolvable:$true] %s296_s18 }
  0x14   : > { %s309_s21 = sshll.u32 %s2423_s20, 4  ;;  %s2974_s5 = sld [smem:[#allocation21_spill]]  ;;  %s2530_s21 = int_to_ptr.vmem [resolvable:$true] %s309_s21 }
  0x15   : > { %s2972_s16 = scalar_select %p2515_p3, 1, 0 }
  0x16   : > { %p2066_p5 = pneg %p2515_p3 }
  0x18   : > { %p2524_p6 = pnand %p2066_p5, %p2963_p1 }
  0x1a   : > { %s2165_s24 = scalar_lea.hbm %s2974_s5, 512  ;;  %p2540_p8 = pneg %p2524_p6 }
  0x1b   : > { %p2166_p7 = scmp.ne.s32.totalorder %s2974_s5, %s2165_s24  ;;  %p2172_p11 = scmp.lt.u32.totalorder %s2165_s24, %s2974_s5 }
  0x1d   : > { %p2168_p9 = pnand %p2540_p8, %p2166_p7 }
  0x1f   : > { %p2169_p10 = pneg %p2168_p9 }
  0x21   : > { %p2174_p12 = pnand %p2172_p11, %p2169_p10 }
  0x23   : > { %2177 = shalt.err (!%p2174_p12)
}
  0x24   : > { %s2178_s13 = scalar_lea.vmem %s2513_s14, 512  ;;  %p2186_p5 = scmp.lt.s32.totalorder %s2513_s14, %s2513_s14 }
  0x25   : > { %p2179_p13 = scmp.ne.s32.totalorder %s2513_s14, %s2178_s13  ;;  %p2187_p4 = scmp.lt.s32.totalorder %s2178_s13, %s2178_s13 }
  0x27   : > { %p2181_p0 = pnand %p2179_p13, %p2540_p8  ;;  %p2188_p7 = por %p2187_p4, %p2186_p5 }
  0x29   : > { %p2182_p2 = pneg %p2181_p0 }
  0x2b   : > { %p2189_p9 = pnand %p2188_p7, %p2182_p2 }
  0x2d   : > { %2192 = shalt.err (!%p2189_p9)
}
  0x2e   : > { %s2424_s17 = smov 128   ;;  %s2425_s20 = smov 8  }
  0x2f   : > { %2069 = dma.hbm_to_vmem [thread:$0]  (!%p2524_p6), %s2974_s5, 512, %s2513_s14, [#allocation6], %s2424_s17, %s2424_s17, %s2425_s20  }
  0x30   : > { %s2976_s6 = sld [smem:[#allocation22_spill]] }
  0x36   : > { %s2193_s26 = scalar_lea.hbm %s2976_s6, 512 }
  0x37   : > { %p2194_p4 = scmp.ne.s32.totalorder %s2976_s6, %s2193_s26  ;;  %p2200_p12 = scmp.lt.u32.totalorder %s2193_s26, %s2976_s6 }
  0x39   : > { %p2196_p10 = pnand %p2194_p4, %p2540_p8 }
  0x3b   : > { %p2197_p11 = pneg %p2196_p10 }
  0x3d   : > { %p2202_p13 = pnand %p2200_p12, %p2197_p11 }
  0x3f   : > { %2205 = shalt.err (!%p2202_p13)
}
  0x40   : > { %s2206_s14 = scalar_lea.vmem %s2528_s18, 512  ;;  %p2214_p7 = scmp.lt.s32.totalorder %s2528_s18, %s2528_s18 }
  0x41   : > { %p2207_p0 = scmp.ne.s32.totalorder %s2528_s18, %s2206_s14  ;;  %p2215_p9 = scmp.lt.s32.totalorder %s2206_s14, %s2206_s14 }
  0x43   : > { %p2209_p2 = pnand %p2207_p0, %p2540_p8  ;;  %p2216_p4 = por %p2215_p9, %p2214_p7 }
  0x45   : > { %p2210_p5 = pneg %p2209_p2 }
  0x47   : > { %p2217_p10 = pnand %p2216_p4, %p2210_p5 }
  0x49   : > { %2220 = shalt.err (!%p2217_p10)
}
  0x4a   : > { %2072 = dma.hbm_to_vmem [thread:$0]  (!%p2524_p6), %s2976_s6, 512, %s2528_s18, [#allocation9], %s2424_s17, %s2424_s17, %s2425_s20  }
  0x4b   : > { %s2977_s7 = sld [smem:[#allocation23_spill]] }
  0x51   : > { %s2221_s25 = scalar_lea.hbm %s2977_s7, 512 }
  0x52   : > { %p2222_p11 = scmp.ne.s32.totalorder %s2977_s7, %s2221_s25  ;;  %p2228_p0 = scmp.lt.u32.totalorder %s2221_s25, %s2977_s7 }
  0x54   : > { %p2224_p12 = pnand %p2222_p11, %p2540_p8 }
  0x56   : > { %p2225_p13 = pneg %p2224_p12 }
  0x58   : > { %p2230_p2 = pnand %p2228_p0, %p2225_p13 }
  0x5a   : > { %2233 = shalt.err (!%p2230_p2)
}
  0x5b   : > { %s2234_s18 = scalar_lea.vmem %s2530_s21, 512  ;;  %p2242_p4 = scmp.lt.s32.totalorder %s2530_s21, %s2530_s21 }
  0x5c   : > { %p2235_p5 = scmp.ne.s32.totalorder %s2530_s21, %s2234_s18  ;;  %p2243_p10 = scmp.lt.s32.totalorder %s2234_s18, %s2234_s18 }
  0x5e   : > { %p2237_p7 = pnand %p2235_p5, %p2540_p8  ;;  %p2244_p11 = por %p2243_p10, %p2242_p4 }
  0x60   : > { %p2238_p9 = pneg %p2237_p7 }
  0x62   : > { %p2245_p12 = pnand %p2244_p11, %p2238_p9 }
  0x64   : > { %2248 = shalt.err (!%p2245_p12)
}
  0x65   : > { %2075 = dma.hbm_to_vmem [thread:$0]  (!%p2524_p6), %s2977_s7, 512, %s2530_s21, [#allocation9], %s2424_s17, %s2424_s17, %s2425_s20  }
  0x66   : > { %s2426_s22 = smov [#allocation11]   ;;  %s2978_s8 = sld [smem:[#allocation24_spill]] }
  0x67   : > { %s322_s23 = sshll.u32 %s2426_s22, 4  ;;  %s323_s23 = int_to_ptr.vmem [resolvable:$true] %s322_s23 }
  0x6c   : > { %s2249_s26 = scalar_lea.hbm %s2978_s8, 512 }
  0x6d   : > { %p2250_p13 = scmp.ne.s32.totalorder %s2978_s8, %s2249_s26  ;;  %p2256_p5 = scmp.lt.u32.totalorder %s2249_s26, %s2978_s8 }
  0x6f   : > { %p2252_p0 = pnand %p2250_p13, %p2540_p8 }
  0x71   : > { %p2253_p2 = pneg %p2252_p0 }
  0x73   : > { %p2258_p7 = pnand %p2256_p5, %p2253_p2 }
  0x75   : > { %2261 = shalt.err (!%p2258_p7)
}
  0x76   : > { %s2262_s21 = scalar_lea.vmem %s323_s23, 512  ;;  %p2270_p11 = scmp.lt.s32.totalorder %s323_s23, %s323_s23 }
  0x77   : > { %p2263_p9 = scmp.ne.s32.totalorder %s323_s23, %s2262_s21  ;;  %p2271_p12 = scmp.lt.s32.totalorder %s2262_s21, %s2262_s21 }
  0x79   : > { %p2265_p4 = pnand %p2263_p9, %p2540_p8  ;;  %p2272_p1 = por %p2271_p12, %p2270_p11 }
  0x7b   : > { %p2266_p10 = pneg %p2265_p4 }
  0x7d   : > { %p2273_p3 = pnand %p2272_p1, %p2266_p10 }
  0x7f   : > { %2276 = shalt.err (!%p2273_p3)
}
  0x80   : > { %2078 = dma.hbm_to_vmem [thread:$0]  (!%p2524_p6), %s2978_s8, 512, %s323_s23, [#allocation12], %s2424_s17, %s2424_s17, %s2425_s20  }
  0x81   : > { %s1850_s19 = sadd.s32 4294967294, %s2419_s12   ;;  %s2639_s27 = sadd.s32 1, %s2419_s12  }
  0x82   : > { %s34_s22 = ssub.s32 %s2419_s12, %s2639_s27  ;;  %s37_s24 = sadd.s32 1, %s2415_s11 }
  0x83   : > { %p35_p1 = scmp.eq.s32.totalorder %s34_s22, 0  ;;  %p44_p3 = scmp.ne.s32.totalorder %s2415_s11, %s2411_s10 }
  0x84   : > { %p45_p8 = scmp.eq.s32.totalorder %s2419_s12, 0  ;;  %p50_p13 = scmp.ne.s32.totalorder %s2411_s10, %s2407_s30 }
  0x85   : > { %s2650_s25 = scalar_select %p35_p1, %s2415_s11, %s37_s24  }
  0x86   : > { %p2652_p0 = por %p45_p8, %p44_p3  ;;  %p2981_p2 = scmp.eq.s32.totalorder %s2508_s15, 0 }
  0x87   : > { %2979 = sst [smem:[#allocation20_spill]] %s2650_s25  ;;  %p252_p5 = scmp.eq.s32.totalorder %s2508_s15, 1 }
  0x88   : > { %p2658_p6 = por %p2981_p2, %p50_p13  ;;  %p258_p7 = scmp.eq.s32.totalorder %s1850_s19, 1 }
  0x89   : > { %p2094_p9 = scmp.lt.s32.totalorder %s2419_s12, 2  ;;  %s336_s20 = sand.u32 1, %s2415_s11  }
  0x8a   : > { %s2982_s17 = scalar_select %p2658_p6, 1, 0 }
  0x8b   : > { %p2665_p4 = por %p252_p5, %p44_p3  ;;  %p2669_p10 = por %p258_p7, %p50_p13 }
  0x8c   : > { %s2673_s29 = sshll.u32 %s336_s20, 3  ;;  %s1858_s13 = sshll.u32 %s2419_s12, 7 }
  0x8d   : > { %s2983_s23 = scalar_select %p2665_p4, 1, 0 }
  0x8e   : > { %s2984_s28 = scalar_select %p2669_p10, 1, 0 }
  0x8f   : > { %s2679_s14 = scalar_lea.hbm %s2952_s0, %s1858_s13  ;;  %s340_s9 = scalar_lea.vmem [#allocation2], %s2673_s29 }
  0x90   : > { %s347_s19 = sshll.u32 %s340_s9, 4  ;;  %p2686_p11 = pnand %p2094_p9, %p2652_p0  ;;  %s2682_s19 = int_to_ptr.vmem [resolvable:$true] %s347_s19 }
  0x91   : > { %s2693_s18 = scalar_lea.hbm %s2953_s1, %s1858_s13  ;;  %s354_s21 = sand.u32 1, %s2419_s12  }
  0x92   : > { %s337_s6 = scalar_lea.sflag [#allocation3], %s336_s20  ;;  %s2277_s7 = scalar_lea.hbm %s2679_s14, 128 }
  0x93   : > { %p2278_p12 = scmp.ne.s32.totalorder %s2679_s14, %s2277_s7  ;;  %p2279_p1 = pneg %p2686_p11 }
  0x94   : > { %s2282_s8 = scalar_lea.hbm %s2952_s0, 256  ;;  %p2283_p13 = scmp.lt.u32.totalorder %s2679_s14, %s2952_s0 }
  0x95   : > { %p2280_p3 = pnand %p2279_p1, %p2278_p12  ;;  %p2284_p0 = scmp.lt.u32.totalorder %s2282_s8, %s2277_s7 }
  0x96   : > { %p2286_p5 = scmp.lt.u32.totalorder %s2277_s7, %s2679_s14 }
  0x97   : > { %p2281_p8 = pneg %p2280_p3  ;;  %p2285_p2 = por %p2284_p0, %p2283_p13 }
  0x99   : > { %p2287_p7 = por %p2286_p5, %p2285_p2 }
  0x9b   : > { %p2288_p9 = pnand %p2287_p7, %p2281_p8 }
  0x9d   : > { %2291 = shalt.err (!%p2288_p9)
}
  0x9e   : > { %s2292_s20 = scalar_lea.vmem %s2682_s19, 128  ;;  %s2427_s13 = smov [#allocation2]  }
  0x9f   : > { %p2293_p12 = scmp.ne.s32.totalorder %s2682_s19, %s2292_s20  ;;  %s2297_s24 = sshll.u32 %s2427_s13, 4  ;;  %s2298_s24 = int_to_ptr.vmem [resolvable:$false] %s2297_s24 }
  0xa0   : > { %s2299_s25 = scalar_lea.vmem %s2298_s24, 256  ;;  %p2300_p4 = scmp.lt.s32.totalorder %s2682_s19, %s2298_s24 }
  0xa1   : > { %p2295_p3 = pnand %p2293_p12, %p2279_p1  ;;  %p2301_p13 = scmp.lt.s32.totalorder %s2299_s25, %s2292_s20 }
  0xa3   : > { %p2296_p10 = pneg %p2295_p3  ;;  %p2302_p0 = por %p2301_p13, %p2300_p4 }
  0xa5   : > { %p2303_p2 = pnand %p2302_p0, %p2296_p10 }
  0xa7   : > { %2306 = shalt.err (!%p2303_p2)
}
  0xa8   : > { %2082 = dma.hbm_to_vmem [thread:$0]  (!%p2686_p11), %s2679_s14, 128, %s2682_s19, %s337_s6  }
  0xa9   : > { %s358_s7 = scalar_lea.vmem [#allocation5], %s2673_s29  ;;  %s355_s26 = scalar_lea.sflag [#allocation6], %s354_s21 }
  0xaa   : > { %s365_s8 = sshll.u32 %s358_s7, 4  ;;  %s2307_s9 = scalar_lea.hbm %s2693_s18, 128  ;;  %s366_s8 = int_to_ptr.vmem [resolvable:$true] %s365_s8 }
  0xab   : > { %p2308_p4 = scmp.ne.s32.totalorder %s2693_s18, %s2307_s9  ;;  %s2312_s13 = scalar_lea.hbm %s2953_s1, 256 }
  0xac   : > { %p2313_p5 = scmp.lt.u32.totalorder %s2693_s18, %s2953_s1  ;;  %p2314_p7 = scmp.lt.u32.totalorder %s2312_s13, %s2307_s9 }
  0xad   : > { %p2310_p10 = pnand %p2308_p4, %p2279_p1  ;;  %p2316_p12 = scmp.lt.u32.totalorder %s2307_s9, %s2693_s18 }
  0xae   : > { %p2315_p9 = por %p2314_p7, %p2313_p5 }
  0xaf   : > { %p2311_p8 = pneg %p2310_p10 }
  0xb0   : > { %p2317_p3 = por %p2316_p12, %p2315_p9 }
  0xb2   : > { %p2318_p13 = pnand %p2317_p3, %p2311_p8 }
  0xb4   : > { %2321 = shalt.err (!%p2318_p13)
}
  0xb5   : > { %s2322_s6 = scalar_lea.vmem %s366_s8, 128  ;;  %s2428_s29 = smov [#allocation5]  }
  0xb6   : > { %p2323_p0 = scmp.ne.s32.totalorder %s366_s8, %s2322_s6  ;;  %s2327_s14 = sshll.u32 %s2428_s29, 4  ;;  %s2328_s14 = int_to_ptr.vmem [resolvable:$false] %s2327_s14 }
  0xb7   : > { %s2329_s19 = scalar_lea.vmem %s2328_s14, 256  ;;  %p2330_p10 = scmp.lt.s32.totalorder %s366_s8, %s2328_s14 }
  0xb8   : > { %p2325_p2 = pnand %p2323_p0, %p2279_p1  ;;  %p2331_p6 = scmp.lt.s32.totalorder %s2329_s19, %s2322_s6 }
  0xba   : > { %p2326_p4 = pneg %p2325_p2  ;;  %p2332_p5 = por %p2331_p6, %p2330_p10 }
  0xbc   : > { %p2333_p7 = pnand %p2332_p5, %p2326_p4 }
  0xbe   : > { %2336 = shalt.err (!%p2333_p7)
}
  0xbf   : > { %2085 = dma.hbm_to_vmem [thread:$0]  (!%p2686_p11), %s2693_s18, 128, %s366_s8, %s355_s26  }
  0xc0   : > { %p2986_p8 = scmp.ne.s32.totalorder %s2972_s16, 0 }
  0xc1   : > { %s2746_s21 = sand.u32 (!%p2986_p8), 1, %s2411_s10   ;;  %p2987_p6 = scmp.ne.s32.totalorder (!%p2986_p8), %s2982_s17, 0 }
  0xc2   : > { %380 = sbr.rel (%p2986_p8) target bundleno = 3116 (0xc2c), region = 56  ;;  %s2749_s7 = sshll.u32 (!%p2986_p8), %s2746_s21, 3 }
  0xc3   : > { %s383_s9 = scalar_lea.sflag (!%p2986_p8), [#allocation3], %s2746_s21  ;;  %s386_s5 = scalar_lea.vmem (!%p2986_p8), [#allocation2], %s2749_s7 }
  0xc9   : > { %2382 = dma.done.wait (%p2987_p6), %s383_s9, 128  }
  0xca   : > { %2384 = vsyncadd (%p2987_p6), %s383_s9, 4294967168  ;;  %s391_s16 = sand.u32 1, %s2508_s15   ;;  %s395_s18 = scalar_lea.vmem [#allocation5], %s2749_s7 }
  0xcb   : > { %s392_s22 = scalar_lea.sflag [#allocation6], %s391_s16 }
  0xcc   : > { %2386 = dma.done.wait (%p2987_p6), %s392_s22, 128  }
  0xcd   : > { %2388 = vsyncadd (%p2987_p6), %s392_s22, 4294967168  ;;  %p2988_p11 = scmp.eq.s32.totalorder %s2508_s15, 0 }
  0xcf   : > { %2390 = dma.done.wait (%p2988_p11), [#allocation6], 512   ;;  %p2989_p1 = pmov %p2988_p11 }
  0xd1   : > { %2392 = vsyncadd (%p2989_p1), [#allocation6], 4294966784  ;;  %p2990_p9 = pmov %p2989_p1 }
  0xd2   : > { %p2991_p12 = pmov %p2989_p1 }
  0xd3   : > { %2394 = dma.done.wait (%p2990_p9), [#allocation9], 1024  }
  0xd4   : > { %2396 = vsyncadd (%p2991_p12), [#allocation9], 4294966272  ;;  %p2992_p3 = pmov %p2989_p1 }
  0xd5   : > { %p2993_p13 = pmov %p2989_p1 }
  0xd6   : > { %2398 = dma.done.wait (%p2992_p3), [#allocation12], 512  }
  0xd7   : > { %2400 = vsyncadd (%p2993_p13), [#allocation12], 4294966784  ;;  %vm463_vm0 = vcmask 261120   ;;  %v2775_v0 = vld [vmem:[%s395_s18] sm:$0xff]  ;;  %v500_v7 = vld [vmem:[#allocation7] sm:$0xff]  ;;  %v2429_v10 = vmov 0.0|0.0   ;;  %v811_v51 = vlaneseq }
  0xd8   : > { %v464_v1 = vsel %vm463_vm0, %v2775_v0, 0.0  ;;  %v501_v8 = vld [vmem:[#allocation7 + $0x8] sm:$0xff]  ;;  %v502_v9 = vld [vmem:[#allocation7 + $0x10] sm:$0xff]  ;;  %2026 = vmatprep.subr.bf16.mxu0 %v2429_v10  ;;  %v503_v12 = vld [vmem:[#allocation7 + $0x18] sm:$0xff]  ;;  %vm2430_vm1 = vmmov 0   ;;  %v2431_v13 = vmov 0.0   ;;  %2032 = vmatprep.subr.bf16.mxu1 %v2429_v10 }
  0xd9   : > { %465 = vadd.xlane.f32.xlu0 %v464_v1  ;;  %v2027_v11 = vpack.c.bf16 %v501_v8, %v500_v7  ;;  %1941 = vmatprep.mubr.msk.f32.mxu0 %vm2430_vm1, %v2431_v13  ;;  %v504_v14 = vld [vmem:[#allocation8] sm:$0xff]  ;;  %v505_v15 = vld [vmem:[#allocation8 + $0x8] sm:$0xff]  ;;  %v2030_v16 = vpack.c.bf16 %v503_v12, %v502_v9  ;;  %v506_v18 = vld [vmem:[#allocation8 + $0x10] sm:$0xff]  ;;  %vm733_vm4 = vcmask 64512   ;;  %s2432_s13 = smov 120   ;;  %p454_p0 = scmp.lt.s32.totalorder %s2508_s15, 1 }
  0xda   : > { %1952 = vmatprep.mubr.msk.f32.mxu1 %vm2430_vm1, %v2431_v13  ;;  %v2033_v17 = vpack.c.bf16 %v505_v15, %v504_v14  ;;  %v507_v19 = vld [vmem:[#allocation8 + $0x18] sm:$0xff]  ;;  %v508_v20 = vld [vmem:[#allocation10] sm:$0xff]  ;;  %v509_v21 = vld [vmem:[#allocation10 + $0x8] sm:$0xff]  ;;  %v812_v53 = vshrl.u32 %v811_v51, 7  ;;  %v2433_v55 = vmov 0   ;;  %s2434_s14 = smov 112  }
  0xdb   : > { %2028 = vmatpush3.bf16.msra.mxu0 %v2027_v11  ;;  %v2036_v22 = vpack.c.bf16 %v507_v19, %v506_v18  ;;  %v457_v23 = vld [vmem:[%s386_s5] sm:$0xff]  ;;  %v2039_v24 = vpack.c.bf16 %v509_v21, %v508_v20  ;;  %v510_v25 = vld [vmem:[#allocation10 + $0x10] sm:$0xff]  ;;  %v511_v26 = vld [vmem:[#allocation10 + $0x18] sm:$0xff]  ;;  %s455_s24 = scalar_select %p454_p0, %s2508_s15, 1 }
  0xdc   : > { %2029 = vmatprep.subr.bf16.mxu0 %v2429_v10  ;;  %2034 = vmatpush3.bf16.msra.mxu1 %v2033_v17  ;;  %v2042_v27 = vpack.c.bf16 %v511_v26, %v510_v25  ;;  %v1869_v36 = vld [vmem:[%s2955_s3] ss:$0 sm:$0xff]  ;;  %v813_v54 = vsub.s32 0, %v812_v53  ;;  %v513_v17 = vld [vmem:[#allocation11 + $0x8] sm:$0xff]  ;;  %s2435_s19 = smov 104   ;;  %s1891_s9 = sshll.u32 %s2508_s15, 7 }
  0xdd   : > { %2035 = vmatprep.subr.bf16.mxu1 %v2429_v10  ;;  %v1870_v39 = vld [vmem:[%s2956_s4] ss:$0 sm:$0xff]  ;;  %s456_s29 = scalar_lea.vmem %s2954_s2, %s455_s24  ;;  %s453_s5 = scalar_lea.vmem [#allocation13], %s2749_s7 }
  0xde   : > { %v459_v52 = vld [vmem:[%s456_s29] sm:$0x1]  ;;  %s1710_s16 = sshll.u32 %s453_s5, 4  ;;  %s2994_s17 = sld [smem:[#allocation25_spill]]  ;;  %s2909_s16 = int_to_ptr.vmem [resolvable:$true] %s1710_s16 }
  0xdf   : > { %2031 = vmatpush3.bf16.msra.mxu0 %v2030_v16  ;;  %vm460_vm5 = vcmp.gt.s32.totalorder %v459_v52, 0  ;;  %s1697_s26 = scalar_lea.sflag [#allocation4], %s2746_s21  ;;  %s2337_s15 = scalar_lea.vmem %s2909_s16, 128 }
  0xe0   : > { %2038 = vmatprep.subr.bf16.mxu0 %v2429_v10  ;;  %2037 = vmatpush3.bf16.msra.mxu1 %v2036_v22  ;;  %v810_v56 = vsel %vm460_vm5, 1, %v2433_v55  ;;  %v512_v22 = vld [vmem:[#allocation11] sm:$0xff]  ;;  %p2338_p2 = scmp.ne.s32.totalorder %s2909_s16, %s2337_s15  ;;  %p2995_p4 = scmp.ne.s32.totalorder %s2983_s23, 0 }
  0xe1   : > { %1966 = vmatprep.subr.mxu1 %v2431_v13  ;;  %v2833_v57 = vrot.slane %v810_v56, %v813_v54  ;;  %s2436_s7 = smov [#allocation13]  }
  0xe2   : > { %1942 = vmatmul.mubr.msk.f32.vlgmr.msra.gmra.mrb[0].mxu0 %vm463_vm0, %v457_v23  ;;  %p2339_p10 = pnand %p2338_p2, %p2995_p4  ;;  %s2341_s20 = sshll.u32 %s2436_s7, 4  ;;  %s2342_s20 = int_to_ptr.vmem [resolvable:$false] %s2341_s20 }
  0xe3   : > { %2040 = vmatpush3.bf16.msra.mxu0 %v2039_v24  ;;  %1963 = vmatprep.mubr.msk.f32.mxu0 %vm2430_vm1, %v2431_v13  ;;  %vm815_vm6 = vcmp.eq.s32.totalorder %v2833_v57, 1  ;;  %v515_v57 = vld [vmem:[#allocation11 + $0x18] sm:$0xff]  ;;  %p2344_p7 = scmp.lt.s32.totalorder %s2909_s16, %s2342_s20 }
  0xe4   : > { %2041 = vmatprep.subr.bf16.mxu0 %v2429_v10  ;;  %s2907_s8 = scalar_lea.hbm %s2994_s17, %s1891_s9  ;;  %p2340_p5 = pneg %p2339_p10 }
  0xe7   : > { %2043 = vmatpush3.bf16.msra.mxu0 %v2042_v27 }
  0xe8   : > { %1976 = vmatprep.subr.mxu0 %v2431_v13 }
 0x166   : > { %v466_v2 = vpop.xlane.xlu0 %465 }
 0x167   : > { %v468_v3 = vmul.f32 0.03125, %v466_v2 }
 0x169   : > { %v469_v4 = vsub.f32 %v2775_v0, %v468_v3 }
 0x16b   : > { %v470_v5 = vmul.f32 %v469_v4, %v469_v4  ;;  %v482_v37 = vmul.f32 %v1869_v36, %v469_v4 }
 0x16d   : > { %v471_v6 = vsel %vm463_vm0, %v470_v5, 0.0 }
 0x16e   : > { %472 = vadd.xlane.f32.xlu0 %v471_v6 }
 0x1b5   : > { %v585_v42 = vpop.f32.mrb[0].mxu0 }
 0x1b6   : > { %v1943_v43 = vpop.f32.mrb[1].mxu0  ;;  %v2804_v44 = vmul.f32 0.35355338, %v585_v42 }
 0x1fb   : > { %v473_v28 = vpop.xlane.xlu0 %472 }
 0x1fc   : > { %v475_v29 = vmul.f32 0.032258064, %v473_v28 }
 0x1fe   : > { %2145 = vrsqrt.f32 %v475_v29  ;;  %vm485_vm2 = vcmp.eq.f32.partialorder %v475_v29, inf  ;;  %v488_v32 = vand.u32 2147483648, %v475_v29  ;;  %vm487_vm3 = vcmp.eq.f32.partialorder %v475_v29, 0.0 }
 0x208   : > { %v2146_v30 = vpop.eup %2145 }
 0x209   : > { %v484_v31 = vmul.f32 %v2146_v30, %v475_v29 }
 0x20b   : > { %v486_v33 = vsel %vm485_vm2, %v475_v29, %v484_v31 }
 0x20c   : > { %v489_v34 = vsel %vm487_vm3, %v488_v32, %v486_v33 }
 0x20d   : > { %v490_v35 = vadd.f32 1e-06, %v489_v34 }
 0x20f   : > { %2147 = vrcp.f32 %v490_v35 }
 0x219   : > { %v2148_v38 = vpop.eup %2147 }
 0x21a   : > { %v492_v40 = vmul.f32 %v2148_v38, %v482_v37 }
 0x21c   : > { %v499_v41 = vadd.f32 %v1870_v39, %v492_v40 }
 0x21e   : > { %1953 = vmatmul.mubr.msk.f32.vlgmr.msra.gmra.mrb[0].mxu1 %vm463_vm0, %v499_v41  ;;  %1964 = vmatmul.mubr.msk.f32.vlgmr.msra.gmra.mrb[2].mxu0 %vm463_vm0, %v499_v41 }
 0x21f   : > { %1968 = vmatprep.mubr.msk.f32.mxu1 %vm2430_vm1, %v2431_v13  ;;  %1978 = vmatprep.mubr.msk.f32.mxu0 %vm2430_vm1, %v2431_v13 }
 0x2f1   : > { %v2806_v45 = vpop.f32.mrb[0].mxu1  ;;  %v2808_v46 = vpop.f32.mrb[2].mxu0 }
 0x2f2   : > { %903 = vrot.lane.b32.xlu1 %v2806_v45, %s2432_s13  ;;  %v1954_v47 = vpop.f32.mrb[1].mxu1  ;;  %v1965_v48 = vpop.f32.mrb[3].mxu0  ;;  %1967 = vmatpush3.xpose.msk.msra.mxu1 %vm733_vm4, %v2806_v45 }
 0x2f3   : > { %1971 = vmatprep.subr.mxu1 %v2431_v13 }
 0x2f5   : > { %1969 = vmatmul.mubr.msk.f32.vlgmr.msra.gmra.mrb[2].mxu1 %vm733_vm4, %v2804_v44 }
 0x2f6   : > { %901 = vrot.lane.b32.xlu1 %v2804_v44, %s2432_s13  ;;  %1972 = vmatpush3.msra.mxu1 %v2808_v46 }
 0x2f7   : > { %1973 = vmatprep.mubr.msk.f32.mxu1 %vm2430_vm1, %v2431_v13  ;;  %1981 = vmatprep.subr.mxu1 %v2431_v13 }
 0x364   : > { %v904_v49 = vpop.permute.xlu1 %903 }
 0x365   : > { %1977 = vmatpush3.xpose.msk.msra.mxu0 %vm733_vm4, %v904_v49 }
 0x366   : > { %1986 = vmatprep.subr.mxu0 %v2431_v13 }
 0x368   : > { %v902_v50 = vpop.permute.xlu1 %901 }
 0x369   : > { %1979 = vmatmul.mubr.msk.f32.vlgmr.msra.gmra.mrb[4].mxu0 %vm733_vm4, %v902_v50 }
 0x36a   : > { %1988 = vmatprep.mubr.msk.f32.mxu0 %vm2430_vm1, %v2431_v13  ;;  %1987 = vmatpush3.msra.mxu0 %v513_v17 }
 0x36b   : > { %1996 = vmatprep.subr.mxu0 %v2431_v13 }
 0x3c8   : > { %v806_v58 = vpop.f32.mrb[2].mxu1 }
 0x3c9   : > { %v816_v59 = vsel %vm815_vm6, -1e+18, %v806_v58  ;;  %v1970_v60 = vpop.f32.mrb[3].mxu1 }
 0x3ca   : > { %v817_v61 = vsel %vm733_vm4, %v816_v59, -inf }
 0x3cb   : > { %818 = vmax.xlane.f32.xlu0 %v817_v61 }
 0x43c   : > { %v975_v62 = vpop.f32.mrb[4].mxu0 }
 0x43d   : > { %v979_v63 = vsel %vm815_vm6, -1e+18, %v975_v62  ;;  %v1980_v1 = vpop.f32.mrb[5].mxu0 }
 0x43e   : > { %v980_v2 = vsel %vm733_vm4, %v979_v63, -inf }
 0x43f   : > { %981 = vmax.xlane.f32.xlu1 %v980_v2 }
 0x450   : > { %1214 = vrot.lane.b32.xlu1 %v2804_v44, %s2434_s14 }
 0x458   : > { %v819_v3 = vpop.xlane.xlu0 %818 }
 0x459   : > { %v820_v4 = vsub.f32 %v816_v59, %v819_v3 }
 0x45b   : > { %v821_v5 = vmul.f32 1.442695, %v820_v4 }
 0x45d   : > { %2149 = vpow2.f32 %v821_v5 }
 0x467   : > { %v2150_v6 = vpop.eup %2149 }
 0x468   : > { %v823_v7 = vsel %vm733_vm4, %v2150_v6, 0.0 }
 0x469   : > { %824 = vadd.xlane.f32.xlu0 %v823_v7 }
 0x4cc   : > { %v982_v8 = vpop.xlane.xlu1 %981 }
 0x4cd   : > { %v983_v9 = vsub.f32 %v979_v63, %v982_v8 }
 0x4cf   : > { %v984_v10 = vmul.f32 1.442695, %v983_v9 }
 0x4d0   : > { %v1215_v28 = vpop.permute.xlu1 %1214 }
 0x4d1   : > { %2151 = vpow2.f32 %v984_v10 }
 0x4db   : > { %v2152_v11 = vpop.eup %2151 }
 0x4dc   : > { %v986_v12 = vsel %vm733_vm4, %v2152_v11, 0.0 }
 0x4dd   : > { %987 = vadd.xlane.f32.xlu0 %v986_v12 }
 0x4f3   : > { %992 = vrot.lane.b32.xlu0 %v2808_v46, %s2432_s13  ;;  %s2343_s13 = scalar_lea.vmem %s2342_s20, 256 }
 0x4f4   : > { %p2345_p8 = scmp.lt.s32.totalorder %s2343_s13, %s2337_s15 }
 0x4f6   : > { %v825_v14 = vpop.xlane.xlu0 %824  ;;  %p2346_p6 = por %p2345_p8, %p2344_p7 }
 0x4f7   : > { %2153 = vrcp.f32 %v825_v14  ;;  %1216 = vrot.lane.b32.xlu0 %v2806_v45, %s2434_s14 }
 0x4f8   : > { %p2347_p11 = pnand %p2346_p6, %p2340_p5 }
 0x501   : > { %v2154_v15 = vpop.eup %2153 }
 0x502   : > { %v827_v16 = vmul.f32 %v2154_v15, %v2150_v6 }
 0x504   : > { %1974 = vmatmul.mubr.msk.f32.vlgmr.msra.gmra.mrb[4].mxu1 %vm733_vm4, %v827_v16 }
 0x505   : > { %1983 = vmatprep.mubr.msk.f32.mxu1 %vm2430_vm1, %v2431_v13 }
 0x56a   : > { %v988_v18 = vpop.xlane.xlu0 %987 }
 0x56b   : > { %2155 = vrcp.f32 %v988_v18 }
 0x56e   : > { %v993_v19 = vpop.permute.xlu0 %992 }
 0x56f   : > { %1982 = vmatpush3.msra.mxu1 %v993_v19 }
 0x570   : > { %1991 = vmatprep.subr.mxu1 %v2431_v13 }
 0x572   : > { %v1217_v26 = vpop.permute.xlu0 %1216 }
 0x575   : > { %v2156_v20 = vpop.eup %2155 }
 0x576   : > { %v990_v21 = vmul.f32 %v2156_v20, %v2152_v11 }
 0x578   : > { %1984 = vmatmul.mubr.msk.f32.vlgmr.msra.gmra.mrb[6].mxu1 %vm733_vm4, %v990_v21 }
 0x579   : > { %1992 = vmatpush3.msra.mxu1 %v512_v22  ;;  %1993 = vmatprep.mubr.msk.f32.mxu1 %vm2430_vm1, %v2431_v13 }
 0x57a   : > { %2001 = vmatprep.subr.mxu1 %v2431_v13 }
 0x5d7   : > { %v897_v23 = vpop.f32.mrb[4].mxu1 }
 0x5d8   : > { %v1975_v24 = vpop.f32.mrb[5].mxu1  ;;  %1994 = vmatmul.mubr.msk.f32.vlgmr.msra.gmra.mrb[8].mxu1 %vm733_vm4, %v897_v23 }
 0x5d9   : > { %2003 = vmatprep.mubr.msk.f32.mxu1 %vm2430_vm1, %v2431_v13 }
 0x64b   : > { %v1064_v25 = vpop.f32.mrb[6].mxu1 }
 0x64c   : > { %v1985_v27 = vpop.f32.mrb[7].mxu1  ;;  %1989 = vmatmul.mubr.msk.f32.vlgmr.msra.gmra.mrb[6].mxu0 %vm733_vm4, %v1064_v25 }
 0x64d   : > { %1997 = vmatpush3.xpose.msk.msra.mxu0 %vm733_vm4, %v1217_v26  ;;  %1998 = vmatprep.mubr.msk.f32.mxu0 %vm2430_vm1, %v2431_v13 }
 0x64e   : > { %2006 = vmatprep.subr.mxu0 %v2431_v13 }
 0x650   : > { %1999 = vmatmul.mubr.msk.f32.vlgmr.msra.gmra.mrb[8].mxu0 %vm733_vm4, %v1215_v28 }
 0x651   : > { %2008 = vmatprep.mubr.msk.f32.mxu0 %vm2430_vm1, %v2431_v13 }
 0x6ab   : > { %v1210_v29 = vpop.f32.mrb[8].mxu1 }
 0x6ac   : > { %v1995_v30 = vpop.f32.mrb[9].mxu1 }
 0x71f   : > { %v1137_v31 = vpop.f32.mrb[6].mxu0 }
 0x720   : > { %v1211_v32 = vadd.f32 %v1210_v29, %v1137_v31  ;;  %v1990_v33 = vpop.f32.mrb[7].mxu0 }
 0x723   : > { %v1288_v34 = vpop.f32.mrb[8].mxu0 }
 0x724   : > { %v1292_v35 = vsel %vm815_vm6, -1e+18, %v1288_v34  ;;  %v2000_v36 = vpop.f32.mrb[9].mxu0 }
 0x725   : > { %v1293_v37 = vsel %vm733_vm4, %v1292_v35, -inf }
 0x726   : > { %1294 = vmax.xlane.f32.xlu0 %v1293_v37 }
 0x73c   : > { %1304 = vrot.lane.b32.xlu0 %v2808_v46, %s2434_s14 }
 0x740   : > { %1454 = vrot.lane.b32.xlu0 %v2804_v44, %s2435_s19 }
 0x7b3   : > { %v1295_v38 = vpop.xlane.xlu0 %1294 }
 0x7b4   : > { %v1296_v39 = vsub.f32 %v1292_v35, %v1295_v38 }
 0x7b6   : > { %v1297_v40 = vmul.f32 1.442695, %v1296_v39 }
 0x7b7   : > { %v1305_v41 = vpop.permute.xlu0 %1304 }
 0x7b8   : > { %2157 = vpow2.f32 %v1297_v40  ;;  %2002 = vmatpush3.msra.mxu1 %v1305_v41 }
 0x7b9   : > { %2011 = vmatprep.subr.mxu1 %v2431_v13 }
 0x7bb   : > { %v1455_v50 = vpop.permute.xlu0 %1454 }
 0x7c2   : > { %v2158_v42 = vpop.eup %2157 }
 0x7c3   : > { %v1299_v43 = vsel %vm733_vm4, %v2158_v42, 0.0 }
 0x7c4   : > { %1300 = vadd.xlane.f32.xlu1 %v1299_v43 }
 0x7d5   : > { %1456 = vrot.lane.b32.xlu1 %v2806_v45, %s2435_s19  ;;  %v514_v45 = vld [vmem:[#allocation11 + $0x10] sm:$0xff] }
 0x7d6   : > { %2007 = vmatpush3.msra.mxu0 %v514_v45 }
 0x7d7   : > { %2016 = vmatprep.subr.mxu0 %v2431_v13 }
 0x851   : > { %v1301_v47 = vpop.xlane.xlu1 %1300 }
 0x852   : > { %2159 = vrcp.f32 %v1301_v47 }
 0x855   : > { %v1457_v44 = vpop.permute.xlu1 %1456 }
 0x85c   : > { %v2160_v48 = vpop.eup %2159 }
 0x85d   : > { %v1303_v49 = vmul.f32 %v2160_v48, %v2158_v42 }
 0x85f   : > { %2004 = vmatmul.mubr.msk.f32.vlgmr.msra.gmra.mrb[10].mxu1 %vm733_vm4, %v1303_v49 }
 0x860   : > { %2012 = vmatpush3.xpose.msk.msra.mxu1 %vm733_vm4, %v1457_v44  ;;  %2013 = vmatprep.mubr.msk.f32.mxu1 %vm2430_vm1, %v2431_v13 }
 0x861   : > { %2021 = vmatprep.subr.mxu1 %v2431_v13 }
 0x863   : > { %2014 = vmatmul.mubr.msk.f32.vlgmr.msra.gmra.mrb[12].mxu1 %vm733_vm4, %v1455_v50 }
 0x864   : > { %2023 = vmatprep.mubr.msk.f32.mxu1 %vm2430_vm1, %v2431_v13  ;;  %2022 = vmatpush3.msra.mxu1 %v515_v57 }
 0x932   : > { %v1376_v51 = vpop.f32.mrb[10].mxu1 }
 0x933   : > { %v2005_v52 = vpop.f32.mrb[11].mxu1  ;;  %2009 = vmatmul.mubr.msk.f32.vlgmr.msra.gmra.mrb[10].mxu0 %vm733_vm4, %v1376_v51 }
 0x934   : > { %2018 = vmatprep.mubr.msk.f32.mxu0 %vm2430_vm1, %v2431_v13 }
 0x936   : > { %v1528_v53 = vpop.f32.mrb[12].mxu1 }
 0x937   : > { %v1532_v54 = vsel %vm815_vm6, -1e+18, %v1528_v53  ;;  %v2015_v55 = vpop.f32.mrb[13].mxu1 }
 0x938   : > { %v1533_v56 = vsel %vm733_vm4, %v1532_v54, -inf }
 0x939   : > { %1534 = vmax.xlane.f32.xlu0 %v1533_v56 }
 0x94f   : > { %1544 = vrot.lane.b32.xlu0 %v2808_v46, %s2435_s19 }
 0x9c6   : > { %v1535_v58 = vpop.xlane.xlu0 %1534 }
 0x9c7   : > { %v1536_v59 = vsub.f32 %v1532_v54, %v1535_v58 }
 0x9c9   : > { %v1537_v60 = vmul.f32 1.442695, %v1536_v59 }
 0x9ca   : > { %v1545_v61 = vpop.permute.xlu0 %1544 }
 0x9cb   : > { %2161 = vpow2.f32 %v1537_v60  ;;  %2017 = vmatpush3.msra.mxu0 %v1545_v61 }
 0x9d5   : > { %v2162_v62 = vpop.eup %2161 }
 0x9d6   : > { %v1539_v13 = vsel %vm733_vm4, %v2162_v62, 0.0 }
 0x9d7   : > { %1540 = vadd.xlane.f32.xlu1 %v1539_v13 }
 0xa06   : > { %v1449_v63 = vpop.f32.mrb[10].mxu0 }
 0xa07   : > { %v1453_v1 = vadd.f32 %v1449_v63, %v1211_v32  ;;  %v2010_v2 = vpop.f32.mrb[11].mxu0 }
 0xa64   : > { %v1541_v3 = vpop.xlane.xlu1 %1540 }
 0xa65   : > { %2163 = vrcp.f32 %v1541_v3 }
 0xa6f   : > { %v2164_v46 = vpop.eup %2163 }
 0xa70   : > { %v1543_v4 = vmul.f32 %v2164_v46, %v2162_v62 }
 0xa72   : > { %2019 = vmatmul.mubr.msk.f32.vlgmr.msra.gmra.mrb[12].mxu0 %vm733_vm4, %v1543_v4 }
 0xb45   : > { %v1616_v5 = vpop.f32.mrb[12].mxu0 }
 0xb46   : > { %v2020_v6 = vpop.f32.mrb[13].mxu0  ;;  %2024 = vmatmul.mubr.msk.f32.vlgmr.msra.gmra.mrb[14].mxu1 %vm733_vm4, %v1616_v5 }
 0xc19   : > { %v1689_v7 = vpop.f32.mrb[14].mxu1 }
 0xc1a   : > { %v1693_v8 = vadd.f32 %v1689_v7, %v1453_v1  ;;  %v2025_v9 = vpop.f32.mrb[15].mxu1 }
 0xc1c   : > { %v1694_v10 = vadd.f32 %v1693_v8, %v2775_v0 }
 0xc1e   : > { %1695 = vst.msk [vmem:[%s453_s5] sm:$0xff] %vm463_vm0, %v1694_v10 }
 0xc1f   : > { %2350 = shalt.err (!%p2347_p11)
}
 0xc20   : > { %s2351_s21 = scalar_lea.hbm %s2907_s8, 128  ;;  %s2355_s6 = scalar_lea.hbm %s2994_s17, 256 }
 0xc21   : > { %p2352_p1 = scmp.ne.s32.totalorder %s2907_s8, %s2351_s21  ;;  %p2356_p3 = scmp.lt.u32.totalorder %s2907_s8, %s2994_s17 }
 0xc22   : > { %p2357_p13 = scmp.lt.u32.totalorder %s2355_s6, %s2351_s21  ;;  %p2359_p2 = scmp.lt.u32.totalorder %s2351_s21, %s2907_s8 }
 0xc23   : > { %p2353_p9 = pnand %p2352_p1, %p2995_p4 }
 0xc24   : > { %p2358_p0 = por %p2357_p13, %p2356_p3 }
 0xc25   : > { %p2354_p12 = pneg %p2353_p9 }
 0xc26   : > { %p2360_p10 = por %p2359_p2, %p2358_p0 }
 0xc28   : > { %p2361_p5 = pnand %p2360_p10, %p2354_p12 }
 0xc2a   : > { %2364 = shalt.err (!%p2361_p5)
}
 0xc2b   : > { %2064 = dma.vmem_to_hbm [thread:$0]  (%p2995_p4), %s2909_s16, 128, %s2907_s8, %s1697_s26  }
 0xc2c PF: > { %s1722_s19 = sand.u32 1, %s2407_s30   ;;  %p2996_p7 = scmp.ne.s32.totalorder %s2984_s28, 0 }
 0xc2d   : > { %p2997_p8 = scmp.ge.s32.totalorder %s2419_s12, 2  ;;  %s1723_s9 = scalar_lea.sflag [#allocation4], %s1722_s19 }
 0xc2f   : > { %p2087_p6 = pnand %p2997_p8, %p2996_p7 }
 0xc31   : > { %2402 = dma.done.wait (!%p2087_p6), %s1723_s9, 128  }
 0xc32   : > { %2404 = vsyncadd (!%p2087_p6), %s1723_s9, 4294967168  ;;  %s2998_s5 = sld [smem:[#allocation20_spill]]  ;;  %p27_p11 = scmp.ge.s32.totalorder %s2639_s27, 4  }
 0xc33   : > { %s2999_s30 = smov %s2411_s10  ;;  %s3000_s10 = smov %s2415_s11 }
 0xc34   : > { %s3002_s12 = smov %s2639_s27  ;;  %29 = sbr.rel (!%p27_p11) target bundleno = 15 (0xf), region = 133 }
 0xc38   : > { %s3001_s11 = smov %s2998_s5 }
 0xc3b   :  { %1728 = vsyncpa [#allocation3], 1 }
 0xc3c   :  { %1730 = vsyncpa [#allocation3 + $0x1], 1 }
 0xc3d   :  { %1731 = vsyncpa [#allocation6], 1 }
 0xc3e   :  { %1733 = vsyncpa [#allocation6 + $0x1], 1 }
 0xc3f   :  { %1734 = vsyncpa [#allocation9], 1 }
 0xc40   :  { %1735 = vsyncpa [#allocation12], 1 }
 0xc41   :  { %1736 = vsyncpa [#allocation4], 1 }
 0xc42   :  { %1738 = vsyncpa [#allocation4 + $0x1], 1 }

</bundles_post_ra>
